<compile_context>
chip_gen: v7x
topology: tpu7x:2x2x1
jax: 0.10.0
libtpu: 0.0.40
codegen_flags: <defaults>
</compile_context>

<pallas_src>
import functools

import jax
import jax.numpy as jnp
from jax.experimental import pallas as pl
from jax.experimental.pallas import tpu as pltpu


def _round_up(x, m):
    return ((x + m - 1) // m) * m


def _ce_loss_kernel(s_ref, t_ref, row_loss_ref, *, inv_temperature, tb,
                    batch_size, mask_rows):
    """One grid step: (tb, C) student+teacher tiles -> (tb, 1) per-row losses."""
    inv_t = jnp.float32(inv_temperature)
    s = s_ref[...].astype(jnp.float32) * inv_t
    t = t_ref[...].astype(jnp.float32) * inv_t

    # Student: numerically-stable logsumexp along the class (lane) axis.
    s_shift = s - jnp.max(s, axis=-1, keepdims=True)                      # XLU max
    s_lse = jnp.log(jnp.sum(jnp.exp(s_shift), axis=-1, keepdims=True))    # EUP + XLU

    # Teacher: numerically-stable softmax numerator / denominator.
    t_exp = jnp.exp(t - jnp.max(t, axis=-1, keepdims=True))               # XLU + EUP
    t_sum = jnp.sum(t_exp, axis=-1, keepdims=True)                        # XLU

    # Identity: sum_c(log_softmax(s) * softmax(t))
    #         = sum_c(s_shift * t_exp) / t_sum - s_lse      (since sum_c q == 1)
    # Avoids materializing log_p / q / prod full-tile temporaries.
    w_sum = jnp.sum(s_shift * t_exp, axis=-1, keepdims=True)              # VPU + XLU
    per_row = w_sum / t_sum - s_lse                                       # (tb, 1)

    if mask_rows:
        # Rows past the real batch (ragged last tile) read unspecified HBM data;
        # a select() zeroes them without propagating possible NaN/Inf.
        row_ids = (pl.program_id(0) * tb
                   + jax.lax.broadcasted_iota(jnp.int32, (tb, 1), 0))
        per_row = jnp.where(row_ids < batch_size, per_row, 0.0)

    row_loss_ref[...] = per_row


def ce_loss_pallas(student_logits, teacher_logits, temperature=1.0, *,
                   tb=None, vmem_limit_bytes=None):
    """Pallas implementation of CE_Loss.forward for (B, C) logits. Returns a scalar."""
    B, C = student_logits.shape
    assert teacher_logits.shape == (B, C), (student_logits.shape, teacher_logits.shape)

    is_s = jnp.dtype(student_logits.dtype).itemsize
    is_t = jnp.dtype(teacher_logits.dtype).itemsize
    # Sublane multiple for the batch tile: 8 for >=4-byte dtypes, 16 for 2-byte.
    sub_mult = max(max(8, 32 // is_s), max(8, 32 // is_t))

    # ---- generation-aware VMEM budgeting (v7x: only 64 MiB per TensorCore) ----
    try:
        vmem_phys = int(pltpu.get_tpu_info().vmem_capacity_bytes)
    except Exception:
        vmem_phys = 64 * 1024 * 1024          # conservative v7x-per-TC assumption
    vmem_budget = vmem_phys // 3
    if vmem_limit_bytes is None:
        vmem_limit_bytes = min(vmem_phys // 2, 64 * 1024 * 1024)

    # ---- batch-tile sizing -----------------------------------------------------
    if tb is None:
        # Live bytes per row: both inputs double-buffered at native dtype plus
        # ~6 f32 temporaries per element inside the kernel (post identity rewrite).
        bytes_per_row = C * (2 * (is_s + is_t) + 6 * 4)
        fit = max(sub_mult, vmem_budget // bytes_per_row)
        # Target >= ~8 MiB of HBM traffic per step to amortize per-step overhead.
        row_bytes_in = C * (is_s + is_t)
        hbm_rows = (8 * 1024 * 1024 + row_bytes_in - 1) // row_bytes_in
        tb = min(fit, max(hbm_rows, sub_mult), _round_up(B, sub_mult))
        tb = max(sub_mult, (tb // sub_mult) * sub_mult)
    assert tb % sub_mult == 0 and tb >= sub_mult, tb

    num_blocks = (B + tb - 1) // tb
    mask_rows = (B % tb) != 0

    kernel = functools.partial(
        _ce_loss_kernel,
        inv_temperature=1.0 / float(temperature),
        tb=tb,
        batch_size=B,
        mask_rows=mask_rows,
    )

    row_losses = pl.pallas_call(
        kernel,
        # Output rows are padded up to num_blocks*tb; masked rows are written 0.
        out_shape=jax.ShapeDtypeStruct((num_blocks * tb, 1), jnp.float32),
        grid=(num_blocks,),
        in_specs=[
            # Full class extent as the lane width: full-dim blocks are exempt
            # from the 128-divisibility rule, so no class padding/copy is needed.
            pl.BlockSpec((tb, C), lambda i: (i, 0)),
            pl.BlockSpec((tb, C), lambda i: (i, 0)),
        ],
        out_specs=pl.BlockSpec((tb, 1), lambda i: (i, 0)),
        compiler_params=pltpu.CompilerParams(
            # No loop-carried state: the batch axis is fully parallel (megacore
            # can shard it across TensorCores on v7x).
            dimension_semantics=("parallel",),
            vmem_limit_bytes=int(vmem_limit_bytes),
        ),
    )(student_logits, teacher_logits)

    T = jnp.float32(temperature)
    return (-T * T) * jnp.sum(row_losses) / jnp.float32(B)


def ce_loss_reference(student_logits, teacher_logits, temperature=1.0):
    """Plain-JAX reference matching the PyTorch module."""
    T = temperature
    log_p = jax.nn.log_softmax(student_logits.astype(jnp.float32) / T, axis=1)
    q = jax.nn.softmax(teacher_logits.astype(jnp.float32) / T, axis=1)
    return -T * T * jnp.sum(log_p * q) / student_logits.shape[0]


if __name__ == "__main__":
    key = jax.random.PRNGKey(0)
    k1, k2, k3, k4 = jax.random.split(key, 4)

    # Primary check: small lane-aligned shapes (batch=16, classes=128).
    B, C, T = 16, 128, 2.0
    student = jax.random.normal(k1, (B, C), dtype=jnp.float32)
    teacher = jax.random.normal(k2, (B, C), dtype=jnp.float32)
    loss = jax.block_until_ready(ce_loss_pallas(student, teacher, T))
    ref = ce_loss_reference(student, teacher, T)
    assert jnp.allclose(loss, ref, rtol=1e-5, atol=1e-5), (loss, ref)

    # Ragged shapes: exercises the cdiv grid + in-kernel row mask and a
    # non-128-multiple class width (full-dim block, no padding copies).
    B2, C2 = 10, 100
    s2 = jax.random.normal(k3, (B2, C2), dtype=jnp.float32)
    t2 = jax.random.normal(k4, (B2, C2), dtype=jnp.float32)
    loss2 = jax.block_until_ready(ce_loss_pallas(s2, t2, T))
    ref2 = ce_loss_reference(s2, t2, T)
    assert jnp.allclose(loss2, ref2, rtol=1e-5, atol=1e-5), (loss2, ref2)

    # Mixed dtypes: bf16 student + f32 teacher passed at native dtypes
    # (no wrapper-side promotion pass); the kernel upcasts internally.
    s3 = student.astype(jnp.bfloat16)
    loss3 = jax.block_until_ready(ce_loss_pallas(s3, teacher, T))
    ref3 = ce_loss_reference(s3, teacher, T)
    assert jnp.allclose(loss3, ref3, rtol=1e-5, atol=1e-5), (loss3, ref3)

    print("KERNEL_OK")
</pallas_src>

<mosaic_0001>
module attributes {stable_mosaic.version = 11 : i64} {
  func.func @_ce_loss_kernel(%arg0: i32, %arg1: memref<16x128xf32, #tpu.memory_space<vmem>>, %arg2: memref<16x128xf32, #tpu.memory_space<vmem>>, %arg3: memref<16x1xf32, #tpu.memory_space<vmem>>) attributes {dimension_semantics = [#tpu.dimension_semantics<parallel>], iteration_bounds = array<i64: 1>, scalar_prefetch = 0 : i64, scratch_operands = 0 : i64, tpu.core_type = #tpu.core_type<tc>, window_params = [{transform_indices = @transform_0, window_bounds = array<i64: 16, 128>}, {transform_indices = @transform_1, window_bounds = array<i64: 16, 128>}, {transform_indices = @transform_2, window_bounds = array<i64: 16, 1>}]} {
    %c0 = arith.constant 0 : index
    %c0_0 = arith.constant 0 : index
    %0 = vector.load %arg1[%c0, %c0_0] : memref<16x128xf32, #tpu.memory_space<vmem>>, vector<16x128xf32>
    %cst = arith.constant 5.000000e-01 : f32
    %1 = vector.broadcast %cst : f32 to vector<16x128xf32>
    %2 = arith.mulf %0, %1 : vector<16x128xf32>
    %c0_1 = arith.constant 0 : index
    %c0_2 = arith.constant 0 : index
    %3 = vector.load %arg2[%c0_1, %c0_2] : memref<16x128xf32, #tpu.memory_space<vmem>>, vector<16x128xf32>
    %cst_3 = arith.constant 5.000000e-01 : f32
    %4 = vector.broadcast %cst_3 : f32 to vector<16x128xf32>
    %5 = arith.mulf %3, %4 : vector<16x128xf32>
    %cst_4 = arith.constant dense<0xFF800000> : vector<16xf32>
    %6 = vector.multi_reduction <maximumf>, %2, %cst_4 [1] : vector<16x128xf32> to vector<16xf32>
    %7 = vector.shape_cast %6 : vector<16xf32> to vector<16x1xf32>
    %8 = vector.broadcast %7 : vector<16x1xf32> to vector<16x128xf32>
    %9 = arith.subf %2, %8 : vector<16x128xf32>
    %10 = math.exp %9 : vector<16x128xf32>
    %cst_5 = arith.constant dense<0.000000e+00> : vector<16xf32>
    %11 = vector.multi_reduction <add>, %10, %cst_5 [1] : vector<16x128xf32> to vector<16xf32>
    %12 = vector.shape_cast %11 : vector<16xf32> to vector<16x1xf32>
    %13 = math.log %12 : vector<16x1xf32>
    %cst_6 = arith.constant dense<0xFF800000> : vector<16xf32>
    %14 = vector.multi_reduction <maximumf>, %5, %cst_6 [1] : vector<16x128xf32> to vector<16xf32>
    %15 = vector.shape_cast %14 : vector<16xf32> to vector<16x1xf32>
    %16 = vector.broadcast %15 : vector<16x1xf32> to vector<16x128xf32>
    %17 = arith.subf %5, %16 : vector<16x128xf32>
    %18 = math.exp %17 : vector<16x128xf32>
    %cst_7 = arith.constant dense<0.000000e+00> : vector<16xf32>
    %19 = vector.multi_reduction <add>, %18, %cst_7 [1] : vector<16x128xf32> to vector<16xf32>
    %20 = vector.shape_cast %19 : vector<16xf32> to vector<16x1xf32>
    %21 = arith.mulf %9, %18 : vector<16x128xf32>
    %cst_8 = arith.constant dense<0.000000e+00> : vector<16xf32>
    %22 = vector.multi_reduction <add>, %21, %cst_8 [1] : vector<16x128xf32> to vector<16xf32>
    %23 = vector.shape_cast %22 : vector<16xf32> to vector<16x1xf32>
    %24 = arith.divf %23, %20 : vector<16x1xf32>
    %25 = arith.subf %24, %13 : vector<16x1xf32>
    %c0_9 = arith.constant 0 : index
    %c0_10 = arith.constant 0 : index
    %26 = vector.load %arg3[%c0_9, %c0_10] : memref<16x1xf32, #tpu.memory_space<vmem>>, vector<16x1xf32>
    tpu.vector_store %arg3[%c0_9, %c0_10], %25 {strides = array<i32>} : memref<16x1xf32, #tpu.memory_space<vmem>>, vector<16x1xf32>,
    return
  }
  func.func @transform_0(%arg0: i32) -> (i32, i32) {
    %c0_i32 = arith.constant 0 : i32
    %c0_i32_0 = arith.constant 0 : i32
    return %arg0, %c0_i32 : i32, i32
  }
  func.func @transform_1(%arg0: i32) -> (i32, i32) {
    %c0_i32 = arith.constant 0 : i32
    %c0_i32_0 = arith.constant 0 : i32
    return %arg0, %c0_i32 : i32, i32
  }
  func.func @transform_2(%arg0: i32) -> (i32, i32) {
    %c0_i32 = arith.constant 0 : i32
    %c0_i32_0 = arith.constant 0 : i32
    return %arg0, %c0_i32 : i32, i32
  }
}

</mosaic_0001>

<bundles_post_ra>
// kernel: tpu_custom_call.1
= control target key start
LH: loop header
LB: loop body
LE: loop exit
PB: predicated region body
PF: predicated region fallthrough
CT: control target
= control target key end

     0   :  { %7 = vsyncpa [#allocation3], 0  ;;  %s217_s0 = inlined_call_operand.hbm [shape: f32[16,128], index: 0, kind: input, shape index: {}]   ;;  %s218_s1 = inlined_call_operand.hbm [shape: f32[16,128], index: 1, kind: input, shape index: {}]   ;;  %s219_s2 = inlined_call_operand.vmem [shape: f32[16,1], index: 2, kind: output, shape index: {}]  }
   0x1   :  { %8 = vsyncpa [#allocation5], 0  ;;  %s168_s9 = smov [#allocation2]   ;;  %s120_s13 = scalar_lea.hbm %s217_s0, 256 }
   0x2   :  { %s14_s10 = sshll.u32 %s168_s9, 4  ;;  %p121_p0 = scmp.ne.s32.totalorder %s217_s0, %s120_s13  ;;  %s15_s10 = int_to_ptr.vmem [resolvable:$true] %s14_s10 }
   0x3   :  { %p124_p1 = scmp.lt.u32.totalorder %s120_s13, %s217_s0 }
   0x5   :  { %p126_p2 = pnand %p124_p1, %p121_p0 }
   0x7   :  { %129 = shalt.err (!%p126_p2)
}
   0x8   :  { %s130_s18 = scalar_lea.vmem %s15_s10, 256  ;;  %p135_p4 = scmp.lt.s32.totalorder %s15_s10, %s15_s10 }
   0x9   :  { %p131_p3 = scmp.ne.s32.totalorder %s15_s10, %s130_s18  ;;  %p136_p5 = scmp.lt.s32.totalorder %s130_s18, %s130_s18 }
   0xb   :  { %p137_p6 = por %p136_p5, %p135_p4 }
   0xd   :  { %p138_p7 = pnand %p137_p6, %p131_p3 }
   0xf   :  { %141 = shalt.err (!%p138_p7)
}
  0x10   :  { %s169_s19 = smov 128   ;;  %s170_s20 = smov 8  }
  0x11   :  { %20 = dma.hbm_to_vmem [thread:$0]  %s217_s0, 256, %s15_s10, [#allocation3], %s169_s19, %s169_s19, %s170_s20  }
  0x12   :  { %s171_s23 = smov [#allocation4]   ;;  %s142_s27 = scalar_lea.hbm %s218_s1, 256 }
  0x13   :  { %s26_s24 = sshll.u32 %s171_s23, 4  ;;  %p143_p8 = scmp.ne.s32.totalorder %s218_s1, %s142_s27  ;;  %s27_s24 = int_to_ptr.vmem [resolvable:$true] %s26_s24 }
  0x14   :  { %p146_p9 = scmp.lt.u32.totalorder %s142_s27, %s218_s1 }
  0x16   :  { %p148_p10 = pnand %p146_p9, %p143_p8 }
  0x18   :  { %151 = shalt.err (!%p148_p10)
}
  0x19   :  { %s152_s4 = scalar_lea.vmem %s27_s24, 256  ;;  %p157_p12 = scmp.lt.s32.totalorder %s27_s24, %s27_s24 }
  0x1a   :  { %p153_p11 = scmp.ne.s32.totalorder %s27_s24, %s152_s4  ;;  %p158_p13 = scmp.lt.s32.totalorder %s152_s4, %s152_s4 }
  0x1c   :  { %p159_p0 = por %p158_p13, %p157_p12 }
  0x1e   :  { %p160_p1 = pnand %p159_p0, %p153_p11 }
  0x20   :  { %163 = shalt.err (!%p160_p1)
}
  0x21   :  { %32 = dma.hbm_to_vmem [thread:$0]  %s218_s1, 256, %s27_s24, [#allocation5], %s169_s19, %s169_s19, %s170_s20  }
  0x22   :  { %164 = dma.done.wait [#allocation3], 256  }
  0x23   :  { %165 = vsyncadd [#allocation3], 4294967040 }
  0x24   :  { %166 = dma.done.wait [#allocation5], 256  }
  0x25   :  { %167 = vsyncadd [#allocation5], 4294967040  ;;  %v43_v0 = vld [vmem:[#allocation4] sm:$0xff]  ;;  %v39_v1 = vld [vmem:[#allocation2] sm:$0xff]  ;;  %vm91_vm0 = vcmask 7168  }
  0x26   :  { %v44_v2 = vld [vmem:[#allocation4 + $0x8] sm:$0xff]  ;;  %v45_v3 = vmul.f32 0.5, %v43_v0  ;;  %v41_v4 = vmul.f32 0.5, %v39_v1  ;;  %v40_v5 = vld [vmem:[#allocation2 + $0x8] sm:$0xff] }
  0x27   :  { %v46_v6 = vmul.f32 0.5, %v44_v2  ;;  %v42_v7 = vmul.f32 0.5, %v40_v5 }
  0x28   :  { %65 = vmax.xlane.f32.xlu1 %v45_v3  ;;  %47 = vmax.xlane.f32.xlu0 %v41_v4 }
  0x2c   :  { %67 = vmax.xlane.f32.xlu1 %v46_v6  ;;  %49 = vmax.xlane.f32.xlu0 %v42_v7 }
  0xb5   :  { %v66_v8 = vpop.xlane.xlu1 %65  ;;  %v48_v9 = vpop.xlane.xlu0 %47 }
  0xb6   :  { %v69_v10 = vsub.f32 %v45_v3, %v66_v8  ;;  %v51_v11 = vsub.f32 %v41_v4, %v48_v9 }
  0xb8   :  { %v53_v12 = vmul.f32 1.442695, %v51_v11  ;;  %v71_v15 = vmul.f32 1.442695, %v69_v10 }
  0xb9   :  { %v68_v13 = vpop.xlane.xlu1 %67  ;;  %v50_v14 = vpop.xlane.xlu0 %49 }
  0xba   :  { %v52_v16 = vsub.f32 %v42_v7, %v50_v14  ;;  %104 = vpow2.f32 %v53_v12  ;;  %v70_v17 = vsub.f32 %v46_v6, %v68_v13 }
  0xbb   :  { %106 = vpow2.f32 %v71_v15 }
  0xbc   :  { %v55_v18 = vmul.f32 1.442695, %v52_v16  ;;  %v73_v19 = vmul.f32 1.442695, %v70_v17 }
  0xbe   :  { %108 = vpow2.f32 %v55_v18 }
  0xbf   :  { %110 = vpow2.f32 %v73_v19 }
  0xc4   :  { %v105_v20 = vpop.eup %104 }
  0xc5   :  { %57 = vadd.xlane.f32.xlu0 %v105_v20  ;;  %v107_v21 = vpop.eup %106 }
  0xc6   :  { %v79_v23 = vmul.f32 %v107_v21, %v51_v11 }
  0xc8   :  { %v109_v22 = vpop.eup %108 }
  0xc9   :  { %75 = vadd.xlane.f32.xlu0 %v107_v21  ;;  %59 = vadd.xlane.f32.xlu1 %v109_v22  ;;  %v111_v24 = vpop.eup %110 }
  0xca   :  { %v80_v25 = vmul.f32 %v111_v24, %v52_v16 }
  0xcd   :  { %81 = vadd.xlane.f32.xlu0 %v79_v23  ;;  %77 = vadd.xlane.f32.xlu1 %v111_v24 }
  0xd1   :  { %83 = vadd.xlane.f32.xlu1 %v80_v25 }
 0x152   :  { %v58_v26 = vpop.xlane.xlu0 %57 }
 0x153   :  { %112 = vlog2.f32 %v58_v26 }
 0x156   :  { %v60_v27 = vpop.xlane.xlu1 %59  ;;  %v76_v28 = vpop.xlane.xlu0 %75 }
 0x157   :  { %114 = vrcp.f32 %v76_v28 }
 0x158   :  { %116 = vlog2.f32 %v60_v27 }
 0x15a   :  { %v78_v29 = vpop.xlane.xlu1 %77  ;;  %v82_v32 = vpop.xlane.xlu0 %81 }
 0x15b   :  { %118 = vrcp.f32 %v78_v29 }
 0x15d   :  { %v113_v30 = vpop.eup %112 }
 0x15e   :  { %v62_v34 = vmul.f32 0.6931472, %v113_v30  ;;  %v84_v38 = vpop.xlane.xlu1 %83 }
 0x161   :  { %v115_v31 = vpop.eup %114 }
 0x162   :  { %v117_v33 = vpop.eup %116  ;;  %v86_v35 = vmul.f32 %v115_v31, %v82_v32 }
 0x163   :  { %v64_v39 = vmul.f32 0.6931472, %v117_v33 }
 0x164   :  { %v89_v37 = vsub.f32 %v86_v35, %v62_v34 }
 0x165   :  { %v119_v36 = vpop.eup %118 }
 0x166   :  { %v88_v40 = vmul.f32 %v119_v36, %v84_v38  ;;  %92 = vst.msk [vmem:[%s219_s2] sm:$0xff] %vm91_vm0, %v89_v37 }
 0x168   :  { %v90_v41 = vsub.f32 %v88_v40, %v64_v39 }
 0x16a   :  { %93 = vst.msk [vmem:[%s219_s2 + $0x8] sm:$0xff] %vm91_vm0, %v90_v41 }
 0x16b   :  { %98 = vsyncpa [#allocation3], 1 }
 0x16c   :  { %99 = vsyncpa [#allocation5], 1 }

</bundles_post_ra>
